<compile_context>
chip_gen: v6e
topology: v6e:2x2x1
jax: 0.10.0
libtpu: 0.0.40
codegen_flags: <defaults>
</compile_context>

<pallas_src>
import jax
import jax.numpy as jnp
from jax.experimental import pallas as pl
from jax.experimental.pallas import tpu as pltpu

LAYERS = [2, 50, 50, 50, 1]
F = 64                 # padded feature width (sublane axis); real width is 50
TM_TARGET = 2048       # batch tile on the lane axis (multiple of 128)


def burgers_mlp_kernel(u_ref, w_ref, p_ref, o_ref):
    """One batch tile of the full 4-layer MLP, fused.

    u_ref: (2, TM)    f32  row 0 = t, row 1 = x (batch in lanes)
    w_ref: (2, F, F)  f32  layers 2..3 weights, (out, in) orientation, zero-padded
    p_ref: (F, 8)     f32  col 0,1 = layer-1 weight columns (w.r.t. t, x),
                           col 2..4 = biases of layers 1..3,
                           col 5 = layer-4 weight row, col 6 = output bias
    o_ref: (1, TM)    f32  network output, lane-dense
    """
    t = u_ref[0:1, :]                      # (1, TM)
    x = u_ref[1:2, :]                      # (1, TM)
    w1t = p_ref[:, 0:1]                    # (F, 1)
    w1x = p_ref[:, 1:2]
    b1 = p_ref[:, 2:3]
    b2 = p_ref[:, 3:4]
    b3 = p_ref[:, 4:5]
    w4 = p_ref[:, 5:6]                     # (F, 1)
    b4 = p_ref[0:1, 6:7]                   # (1, 1)

    # Layer 1: rank-2 update on the VPU (real K is only 2 — skip the matmul).
    h = jnp.tanh(w1t * t + w1x * x + b1)                           # (F, TM)

    # Layers 2-3: f32 MXU matmuls fused with bias + tanh.
    h = jnp.tanh(jnp.dot(w_ref[0], h, preferred_element_type=jnp.float32) + b2)
    h = jnp.tanh(jnp.dot(w_ref[1], h, preferred_element_type=jnp.float32) + b3)

    # Layer 4: single output row -> VPU multiply + cross-sublane sum (XLU),
    # no full-width MXU pass and no (F, TM) intermediate writeback.
    o_ref[...] = (jnp.sum(w4 * h, axis=0, keepdims=True) + b4).astype(o_ref.dtype)


def _pack_params(weights, biases):
    """weights[i]: (out_i, in_i) torch convention.  Pack into two f32 operands."""
    w1, w2, w3, w4 = weights
    b1, b2, b3, b4 = biases

    W = jnp.zeros((2, F, F), jnp.float32)
    W = W.at[0, :w2.shape[0], :w2.shape[1]].set(w2)
    W = W.at[1, :w3.shape[0], :w3.shape[1]].set(w3)

    P = jnp.zeros((F, 8), jnp.float32)
    P = P.at[:w1.shape[0], 0].set(w1[:, 0])   # layer-1 weights w.r.t. t
    P = P.at[:w1.shape[0], 1].set(w1[:, 1])   # layer-1 weights w.r.t. x
    P = P.at[:b1.shape[0], 2].set(b1)
    P = P.at[:b2.shape[0], 3].set(b2)
    P = P.at[:b3.shape[0], 4].set(b3)
    P = P.at[:w4.shape[1], 5].set(w4[0, :])   # layer-4 weight row
    P = P.at[:, 6].set(b4[0])                 # scalar output bias, broadcast
    return W, P


def _pick_tile(n, target=TM_TARGET):
    """Batch tile: multiple of 128, <= target, and grid >= 2 when the batch
    allows it (so v7x's two TensorCores both get work on the parallel axis)."""
    n128 = pl.cdiv(n, 128) * 128
    tm = min(target, n128)
    if n128 > 128 and pl.cdiv(n128, tm) < 2:
        tm = max(128, (n128 // 2 // 128) * 128)
    return tm


def burgers_net(t, x, weights, biases, *, tm=None):
    """t, x: (N, 1) float32. Returns (N, 1) float32, matching BurgersNet.forward."""
    n = t.shape[0]
    if tm is None:
        tm = _pick_tile(n)
    n_pad = pl.cdiv(n, tm) * tm

    # (2, n_pad): row 0 = t, row 1 = x; batch lives on the lane axis.
    u = jnp.concatenate([jnp.reshape(t, (1, n)), jnp.reshape(x, (1, n))], axis=0)
    u = jnp.pad(u, ((0, 0), (0, n_pad - n)))

    W, P = _pack_params(weights, biases)

    out = pl.pallas_call(
        burgers_mlp_kernel,
        out_shape=jax.ShapeDtypeStruct((1, n_pad), jnp.float32),
        grid=(n_pad // tm,),
        in_specs=[
            pl.BlockSpec((2, tm), lambda i: (0, i)),        # one batch tile / step
            pl.BlockSpec((2, F, F), lambda i: (0, 0, 0)),   # weights: VMEM-resident
            pl.BlockSpec((F, 8), lambda i: (0, 0)),         # small params: resident
        ],
        out_specs=pl.BlockSpec((1, tm), lambda i: (0, i)),  # lane-dense output
        compiler_params=pltpu.CompilerParams(
            dimension_semantics=("parallel",),
        ),
    )(u, W, P)

    return jnp.reshape(out[0, :n], (n, 1))


def _init_params(key):
    """Deterministic init mimicking PyTorch nn.Linear default (U(-k, k), k=1/sqrt(in))."""
    weights, biases = [], []
    for i in range(len(LAYERS) - 1):
        in_d, out_d = LAYERS[i], LAYERS[i + 1]
        key, kw, kb = jax.random.split(key, 3)
        bound = 1.0 / jnp.sqrt(jnp.float32(in_d))
        weights.append(jax.random.uniform(kw, (out_d, in_d), jnp.float32,
                                          -bound, bound))
        biases.append(jax.random.uniform(kb, (out_d,), jnp.float32,
                                         -bound, bound))
    return weights, biases


def _reference(t, x, weights, biases):
    u = jnp.concatenate([t, x], axis=1)
    for i in range(len(weights) - 1):
        u = jnp.tanh(u @ weights[i].T + biases[i])
    return u @ weights[-1].T + biases[-1]


if __name__ == "__main__":
    key = jax.random.PRNGKey(0)
    key, kt, kx = jax.random.split(key, 3)
    N = 1000                      # pads to 1024 -> tm=512, grid of 2 tiles
    t = jax.random.normal(kt, (N, 1), jnp.float32)
    x = jax.random.normal(kx, (N, 1), jnp.float32)

    weights, biases = _init_params(key)

    out = burgers_net(t, x, weights, biases)
    out = jax.block_until_ready(out)

    ref = _reference(t, x, weights, biases)
    assert out.shape == (N, 1)
    err = jnp.max(jnp.abs(out - ref))
    # Full-f32 path -> tight tolerance.
    assert jnp.allclose(out, ref, atol=1e-3, rtol=1e-3), (
        f"mismatch vs reference: max abs err = {err:.3e}")

    print("KERNEL_OK")
</pallas_src>

<mosaic_0001>
module attributes {stable_mosaic.version = 11 : i64} {
  func.func @burgers_mlp_kernel(%arg0: i32, %arg1: memref<2x512xf32, #tpu.memory_space<vmem>>, %arg2: memref<2x64x64xf32, #tpu.memory_space<vmem>>, %arg3: memref<64x8xf32, #tpu.memory_space<vmem>>, %arg4: memref<1x512xf32, #tpu.memory_space<vmem>>) attributes {dimension_semantics = [#tpu.dimension_semantics<parallel>], iteration_bounds = array<i64: 2>, scalar_prefetch = 0 : i64, scratch_operands = 0 : i64, tpu.core_type = #tpu.core_type<tc>, window_params = [{transform_indices = @transform_0, window_bounds = array<i64: 2, 512>}, {pipeline_mode = #tpu.pipeline_mode<synchronous>, transform_indices = @transform_1, window_bounds = array<i64: 2, 64, 64>}, {pipeline_mode = #tpu.pipeline_mode<synchronous>, transform_indices = @transform_2, window_bounds = array<i64: 64, 8>}, {transform_indices = @transform_3, window_bounds = array<i64: 1, 512>}]} {
    %c0 = arith.constant 0 : index
    %c0_0 = arith.constant 0 : index
    %0 = vector.load %arg1[%c0, %c0_0] : memref<2x512xf32, #tpu.memory_space<vmem>>, vector<1x512xf32>
    %c1 = arith.constant 1 : index
    %c0_1 = arith.constant 0 : index
    %1 = vector.load %arg1[%c1, %c0_1] : memref<2x512xf32, #tpu.memory_space<vmem>>, vector<1x512xf32>
    %c0_2 = arith.constant 0 : index
    %c0_3 = arith.constant 0 : index
    %2 = vector.load %arg3[%c0_2, %c0_3] : memref<64x8xf32, #tpu.memory_space<vmem>>, vector<64x1xf32>
    %c0_4 = arith.constant 0 : index
    %c1_5 = arith.constant 1 : index
    %3 = vector.load %arg3[%c0_4, %c1_5] : memref<64x8xf32, #tpu.memory_space<vmem>>, vector<64x1xf32>
    %c0_6 = arith.constant 0 : index
    %c2 = arith.constant 2 : index
    %4 = vector.load %arg3[%c0_6, %c2] : memref<64x8xf32, #tpu.memory_space<vmem>>, vector<64x1xf32>
    %c0_7 = arith.constant 0 : index
    %c3 = arith.constant 3 : index
    %5 = vector.load %arg3[%c0_7, %c3] : memref<64x8xf32, #tpu.memory_space<vmem>>, vector<64x1xf32>
    %c0_8 = arith.constant 0 : index
    %c4 = arith.constant 4 : index
    %6 = vector.load %arg3[%c0_8, %c4] : memref<64x8xf32, #tpu.memory_space<vmem>>, vector<64x1xf32>
    %c0_9 = arith.constant 0 : index
    %c5 = arith.constant 5 : index
    %7 = vector.load %arg3[%c0_9, %c5] : memref<64x8xf32, #tpu.memory_space<vmem>>, vector<64x1xf32>
    %c0_10 = arith.constant 0 : index
    %c6 = arith.constant 6 : index
    %8 = vector.load %arg3[%c0_10, %c6] : memref<64x8xf32, #tpu.memory_space<vmem>>, vector<1x1xf32>
    %9 = vector.broadcast %2 : vector<64x1xf32> to vector<64x512xf32>
    %10 = vector.broadcast %0 : vector<1x512xf32> to vector<64x512xf32>
    %11 = arith.mulf %9, %10 : vector<64x512xf32>
    %12 = vector.broadcast %3 : vector<64x1xf32> to vector<64x512xf32>
    %13 = vector.broadcast %1 : vector<1x512xf32> to vector<64x512xf32>
    %14 = arith.mulf %12, %13 : vector<64x512xf32>
    %15 = arith.addf %11, %14 : vector<64x512xf32>
    %16 = vector.broadcast %4 : vector<64x1xf32> to vector<64x512xf32>
    %17 = arith.addf %15, %16 : vector<64x512xf32>
    %18 = math.tanh %17 : vector<64x512xf32>
    %c0_11 = arith.constant 0 : index
    %c0_12 = arith.constant 0 : index
    %c0_13 = arith.constant 0 : index
    %19 = vector.load %arg2[%c0_11, %c0_12, %c0_13] : memref<2x64x64xf32, #tpu.memory_space<vmem>>, vector<1x64x64xf32>
    %20 = vector.shape_cast %19 : vector<1x64x64xf32> to vector<64x64xf32>
    %cst = arith.constant dense<0.000000e+00> : vector<64x512xf32>
    %21 = tpu.matmul %20, %18, %cst {dimension_numbers = #tpu.dot_dimension_numbers<[1], [0], [0], [1], [0, 0, 1, 1], [], []>} : vector<64x64xf32>, vector<64x512xf32>, vector<64x512xf32> -> vector<64x512xf32>
    %22 = vector.broadcast %5 : vector<64x1xf32> to vector<64x512xf32>
    %23 = arith.addf %21, %22 : vector<64x512xf32>
    %24 = math.tanh %23 : vector<64x512xf32>
    %c1_14 = arith.constant 1 : index
    %c0_15 = arith.constant 0 : index
    %c0_16 = arith.constant 0 : index
    %25 = vector.load %arg2[%c1_14, %c0_15, %c0_16] : memref<2x64x64xf32, #tpu.memory_space<vmem>>, vector<1x64x64xf32>
    %26 = vector.shape_cast %25 : vector<1x64x64xf32> to vector<64x64xf32>
    %cst_17 = arith.constant dense<0.000000e+00> : vector<64x512xf32>
    %27 = tpu.matmul %26, %24, %cst_17 {dimension_numbers = #tpu.dot_dimension_numbers<[1], [0], [0], [1], [0, 0, 1, 1], [], []>} : vector<64x64xf32>, vector<64x512xf32>, vector<64x512xf32> -> vector<64x512xf32>
    %28 = vector.broadcast %6 : vector<64x1xf32> to vector<64x512xf32>
    %29 = arith.addf %27, %28 : vector<64x512xf32>
    %30 = math.tanh %29 : vector<64x512xf32>
    %31 = vector.broadcast %7 : vector<64x1xf32> to vector<64x512xf32>
    %32 = arith.mulf %31, %30 : vector<64x512xf32>
    %cst_18 = arith.constant dense<0.000000e+00> : vector<512xf32>
    %33 = vector.multi_reduction <add>, %32, %cst_18 [0] : vector<64x512xf32> to vector<512xf32>
    %34 = vector.shape_cast %33 : vector<512xf32> to vector<1x512xf32>
    %35 = vector.broadcast %8 : vector<1x1xf32> to vector<1x512xf32>
    %36 = arith.addf %34, %35 : vector<1x512xf32>
    %c0_19 = arith.constant 0 : index
    %c0_20 = arith.constant 0 : index
    %37 = vector.load %arg4[%c0_19, %c0_20] : memref<1x512xf32, #tpu.memory_space<vmem>>, vector<1x512xf32>
    tpu.vector_store %arg4[%c0_19, %c0_20], %36 {strides = array<i32>} : memref<1x512xf32, #tpu.memory_space<vmem>>, vector<1x512xf32>,
    return
  }
  func.func @transform_0(%arg0: i32) -> (i32, i32) {
    %c0_i32 = arith.constant 0 : i32
    %c0_i32_0 = arith.constant 0 : i32
    return %c0_i32, %arg0 : i32, i32
  }
  func.func @transform_1(%arg0: i32) -> (i32, i32, i32) {
    %c0_i32 = arith.constant 0 : i32
    %c0_i32_0 = arith.constant 0 : i32
    %c0_i32_1 = arith.constant 0 : i32
    %c0_i32_2 = arith.constant 0 : i32
    return %c0_i32, %c0_i32_0, %c0_i32_1 : i32, i32, i32
  }
  func.func @transform_2(%arg0: i32) -> (i32, i32) {
    %c0_i32 = arith.constant 0 : i32
    %c0_i32_0 = arith.constant 0 : i32
    %c0_i32_1 = arith.constant 0 : i32
    return %c0_i32, %c0_i32_0 : i32, i32
  }
  func.func @transform_3(%arg0: i32) -> (i32, i32) {
    %c0_i32 = arith.constant 0 : i32
    %c0_i32_0 = arith.constant 0 : i32
    return %c0_i32, %arg0 : i32, i32
  }
}

</mosaic_0001>

<bundles_post_ra>
// kernel: tpu_custom_call.1
= control target key start
LH: loop header
LB: loop body
LE: loop exit
PB: predicated region body
PF: predicated region fallthrough
CT: control target
= control target key end

     0   :  { %8 = vsyncpa [#allocation3], 0  ;;  %s2365_s0 = inlined_call_operand.vmem [shape: f32[2,1024], index: 0, kind: input, shape index: {}]   ;;  %s2366_s1 = inlined_call_operand.hbm [shape: f32[2,64,64], index: 1, kind: input, shape index: {}]   ;;  %s2367_s2 = inlined_call_operand.vmem [shape: f32[64,8], index: 2, kind: input, shape index: {}]   ;;  %s2368_s3 = inlined_call_operand.hbm [shape: f32[1,1024], index: 3, kind: output, shape index: {}]  }
   0x1   :  { %9 = vsyncpa [#allocation4], 0 }
   0x2   :  { %11 = vsyncpa [#allocation4 + $0x1], 0  ;;  %s1846_s12 = smov 0   ;;  %s1848_s13 = smov 0  }
   0x3   :  { %s1850_s14 = smov 0   ;;  %s1852_s15 = smov 0  }
   0x4 LB: > { %s1867_s16 = sadd.s32 4294967295, %s1811_s15   ;;  %s1396_s17 = sadd.s32 4294967294, %s1811_s15   ;;  %s1811_s15 = sphi %s1852_s15, %s2376_s15   ;;  %s1807_s14 = sphi %s1850_s14, %s2375_s14   ;;  %s1803_s13 = sphi %s1848_s13, %s2374_s13   ;;  %s1799_s12 = sphi %s1846_s12, %s2373_s12  }
   0x5   : > { %s1871_s18 = sadd.s32 1, %s1811_s15   ;;  %s92_s19 = sadd.s32 1, %s1807_s14 }
   0x6   : > { %s89_s20 = ssub.s32 %s1811_s15, %s1871_s18  ;;  %p102_p0 = scmp.ne.s32.totalorder %s1807_s14, %s1803_s13 }
   0x7   : > { %p90_p1 = scmp.eq.s32.totalorder %s89_s20, 0  ;;  %p103_p2 = scmp.eq.s32.totalorder %s1867_s16, 1 }
   0x8   : > { %p108_p3 = scmp.ne.s32.totalorder %s1803_s13, %s1799_s12  ;;  %p109_p4 = scmp.eq.s32.totalorder %s1396_s17, 1 }
   0x9   : > { %s1882_s21 = scalar_select %p90_p1, %s1807_s14, %s92_s19  }
   0xa   : > { %p1884_p5 = por %p103_p2, %p102_p0  ;;  %p1888_p6 = por %p109_p4, %p108_p3 }
   0xb   : > { %p1397_p7 = scmp.ge.s32.totalorder %s1811_s15, 1  ;;  %p116_p8 = scmp.lt.s32.totalorder %s1811_s15, 3 }
   0xc   : > { %s2370_s23 = scalar_select %p1888_p6, 1, 0 }
   0xd   : > { %p1458_p9 = scmp.eq.s32.totalorder %s1867_s16, 0  ;;  %p1895_p10 = pnand %p1397_p7, %p116_p8 }
   0xe   : > { %s1813_s25 = smov [#allocation2]  }
   0xf   : > { %s128_s26 = sshll.u32 %s1813_s25, 4  ;;  %p1450_p11 = pneg %p1895_p10  ;;  %s129_s26 = int_to_ptr.vmem [resolvable:$true] %s128_s26 }
  0x10   : > { %s1732_s27 = scalar_lea.vmem %s129_s26, 2048  ;;  %p1740_p3 = scmp.lt.s32.totalorder %s129_s26, %s129_s26 }
  0x11   : > { %p1451_p12 = pnand %p1458_p9, %p1450_p11  ;;  %p1733_p0 = scmp.ne.s32.totalorder %s129_s26, %s1732_s27 }
  0x12   : > { %p1741_p4 = scmp.lt.s32.totalorder %s1732_s27, %s1732_s27 }
  0x13   : > { %p1723_p13 = pneg %p1451_p12 }
  0x14   : > { %p1742_p6 = por %p1741_p4, %p1740_p3 }
  0x15   : > { %p1735_p1 = pnand %p1733_p0, %p1723_p13 }
  0x17   : > { %p1736_p2 = pneg %p1735_p1 }
  0x19   : > { %p1743_p7 = pnand %p1742_p6, %p1736_p2 }
  0x1b   : > { %1746 = shalt.err (!%p1743_p7)
}
  0x1c   : > { %s1814_s28 = smov 128   ;;  %s1815_s29 = smov 8  }
  0x1d   : > { %1453 = dma.hbm_to_vmem [thread:$0]  (!%p1451_p12), %s2366_s1, 2048, %s129_s26, [#allocation3], %s1814_s28, %s1814_s28, %s1815_s29  }
  0x1e   : > { %156 = sbr.rel (%p1895_p10) target bundleno = 780 (0x30c), region = 32 }
  0x23   : > { %1790 = dma.done.wait (%p1458_p9), [#allocation3], 2048  }
  0x24   : > { %1792 = vsyncadd (%p1458_p9), [#allocation3], 4294965248  ;;  %v1816_v0 = vmov 0   ;;  %v1915_v1 = vld [vmem:[%s2367_s2 + $0x38] sm:$0xff]  ;;  %v1920_v2 = vld [vmem:[%s2367_s2 + $0x30] sm:$0xff]  ;;  %v1817_v4 = vmov 1   ;;  %v240_v17 = vlaneseq }
  0x25   : > { %1506 = vset.pattern.permute.xlu1 %v1816_v0  ;;  %1505 = vset.pattern.permute.xlu0 %v1816_v0  ;;  %v1927_v3 = vld [vmem:[%s2367_s2 + $0x20] sm:$0xff]  ;;  %v1934_v5 = vld [vmem:[%s2367_s2 + $0x18] sm:$0xff]  ;;  %v1939_v6 = vld [vmem:[%s2367_s2 + $0x28] sm:$0xff]  ;;  %v1818_v7 = vmov 2   ;;  %v1819_v11 = vmov 0.0   ;;  %v1820_v12 = vmov 3  }
  0x26   : > { %236 = vperm.xlu0 %1505, %v1915_v1   ;;  %231 = vperm.xlu1 %1506, %v1920_v2   ;;  %v1953_v8 = vld [vmem:[%s2367_s2 + $0x8] sm:$0xff]  ;;  %v1960_v9 = vld [vmem:[%s2367_s2] sm:$0xff]  ;;  %v1965_v10 = vld [vmem:[%s2367_s2 + $0x10] sm:$0xff]  ;;  %s1403_s30 = sshll.u32 %s1867_s16, 2  ;;  %v1992_v20 = vshrl.u32 %v240_v17, 7  ;;  %vm545_vm0 = vcmask 523264  }
  0x27   : > { %634 = vmatprep.mubr.f32.mxu0 %v1819_v11  ;;  %747 = vmatprep.mubr.f32.mxu1 %v1819_v11  ;;  %p181_p6 = scmp.lt.s32.totalorder %s1403_s30, 7  ;;  %s177_s10 = sand.u32 1, %s1803_s13   ;;  %vm1307_vm1 = vcmp.lt.s32.totalorder %v240_v17, 512 }
  0x28   : > { %v242_v23 = vsub.s32 0, %v1992_v20  ;;  %v246_v24 = vsub.s32 1, %v1992_v20  ;;  %v250_v25 = vsub.s32 2, %v1992_v20  ;;  %v254_v29 = vsub.s32 3, %v1992_v20  ;;  %s1402_s11 = sshll.u32 %s177_s10, 2  ;;  %s1443_s17 = sshll.u32 %s1867_s16, 6 }
  0x29   : > { %s2378_s30 = smov (!%p181_p6, %s1403_s30), 7  ;;  %s179_s19 = scalar_lea.vmem [#allocation5], %s1402_s11 }
  0x2a   : > { %1507 = vset.pattern.permute.xlu1 %v1817_v4  ;;  %221 = vperm.xlu0 %1505, %v1927_v3   ;;  %s1404_s4 = sshll.u32 %s2378_s30, 1  ;;  %s1325_s20 = sshll.u32 %s179_s19, 4  ;;  %s1326_s20 = int_to_ptr.vmem [resolvable:$true] %s1325_s20 }
  0x2b   : > { %317 = vperm.xlu1 %1507, %v1920_v2   ;;  %s184_s7 = scalar_lea.vmem %s2365_s0, %s1404_s4  ;;  %s1323_s26 = scalar_lea.hbm %s2368_s3, %s1443_s17 }
  0x2c   : > { %v187_v26 = vld [vmem:[%s184_s7] ss:$2 sm:$0xf]  ;;  %v1405_v27 = vld [vmem:[%s184_s7 + $0x1] ss:$2 sm:$0xf] }
  0x2d   : > { %v2007_v30 = vrot.slane %v187_v26, %v242_v23  ;;  %v2009_v31 = vrot.slane %v1405_v27, %v242_v23  ;;  %v2013_v33 = vrot.slane %v187_v26, %v246_v24  ;;  %v2015_v34 = vrot.slane %v187_v26, %v250_v25  ;;  %s1311_s27 = scalar_lea.sflag [#allocation4], %s177_s10  ;;  %s1747_s28 = scalar_lea.vmem %s1326_s20, 64 }
  0x2e   : > { %216 = vperm.xlu0 %1505, %v1934_v5   ;;  %v2017_v35 = vrot.slane %v1405_v27, %v246_v24  ;;  %v2019_v36 = vrot.slane %v1405_v27, %v250_v25  ;;  %v2024_v40 = vrot.slane %v187_v26, %v254_v29  ;;  %v2028_v43 = vrot.slane %v1405_v27, %v254_v29  ;;  %p1748_p8 = scmp.ne.s32.totalorder %s1326_s20, %s1747_s28  ;;  %s1825_s29 = smov [#allocation5]  }
  0x2f   : > { %1508 = vset.pattern.permute.xlu1 %v1816_v0  ;;  %s1751_s16 = sshll.u32 %s1825_s29, 4  ;;  %s1752_s16 = int_to_ptr.vmem [resolvable:$false] %s1751_s16 }
  0x30   : > { %226 = vperm.xlu1 %1508, %v1939_v6   ;;  %p1749_p9 = pnand %p1748_p8, %p1884_p5  ;;  %s1753_s30 = scalar_lea.vmem %s1752_s16, 128 }
  0x31   : > { %p1754_p11 = scmp.lt.s32.totalorder %s1326_s20, %s1752_s16  ;;  %p1755_p12 = scmp.lt.s32.totalorder %s1753_s30, %s1747_s28 }
  0x32   : > { %1513 = vset.pattern.permute.xlu0 %v1818_v7  ;;  %p1750_p10 = pneg %p1749_p9 }
  0x33   : > { %430 = vperm.xlu0 %1513, %v1939_v6   ;;  %p1756_p13 = por %p1755_p12, %p1754_p11 }
  0x34   : > { %1509 = vset.pattern.permute.xlu1 %v1818_v7 }
  0x35   : > { %438 = vperm.xlu1 %1509, %v1915_v1   ;;  %p1757_p0 = pnand %p1756_p13, %p1750_p10 }
  0x37   : > { %426 = vperm.xlu0 %1513, %v1927_v3  }
  0x39   : > { %1510 = vset.pattern.permute.xlu1 %v1817_v4 }
  0x3a   : > { %309 = vperm.xlu1 %1510, %v1927_v3  }
  0x3b   : > { %1516 = vset.pattern.permute.xlu0 %v1817_v4 }
  0x3c   : > { %321 = vperm.xlu0 %1516, %v1915_v1  }
  0x3e   : > { %1511 = vset.pattern.permute.xlu1 %v1818_v7 }
  0x3f   : > { %434 = vperm.xlu1 %1511, %v1920_v2  }
  0x40   : > { %313 = vperm.xlu0 %1516, %v1939_v6  }
  0x43   : > { %1512 = vset.pattern.permute.xlu1 %v1817_v4 }
  0x44   : > { %305 = vperm.xlu1 %1512, %v1934_v5   ;;  %297 = vperm.xlu0 %1516, %v1953_v8  }
  0x48   : > { %1514 = vset.pattern.permute.xlu1 %v1816_v0  ;;  %293 = vperm.xlu0 %1516, %v1960_v9  }
  0x49   : > { %211 = vperm.xlu1 %1514, %v1965_v10  }
  0x4c   : > { %1521 = vset.pattern.permute.xlu0 %v1818_v7 }
  0x4d   : > { %1515 = vset.pattern.permute.xlu1 %v1817_v4  ;;  %414 = vperm.xlu0 %1521, %v1953_v8  }
  0x4e   : > { %301 = vperm.xlu1 %1515, %v1965_v10  }
  0x51   : > { %1523 = vset.pattern.permute.xlu0 %v1820_v12 }
  0x52   : > { %1517 = vset.pattern.permute.xlu1 %v1816_v0  ;;  %538 = vperm.xlu0 %1523, %v1920_v2  }
  0x53   : > { %206 = vperm.xlu1 %1517, %v1953_v8  }
  0x56   : > { %526 = vperm.xlu0 %1523, %v1934_v5  }
  0x57   : > { %1518 = vset.pattern.permute.xlu1 %v1818_v7 }
  0x58   : > { %422 = vperm.xlu1 %1518, %v1934_v5  }
  0x5a   : > { %518 = vperm.xlu0 %1523, %v1953_v8  }
  0x5c   : > { %1519 = vset.pattern.permute.xlu1 %v1816_v0 }
  0x5d   : > { %201 = vperm.xlu1 %1519, %v1960_v9  }
  0x61   : > { %1520 = vset.pattern.permute.xlu1 %v1818_v7 }
  0x62   : > { %418 = vperm.xlu1 %1520, %v1965_v10  }
  0x66   : > { %410 = vperm.xlu1 %1520, %v1960_v9  }
  0x6a   : > { %1522 = vset.pattern.permute.xlu1 %v1820_v12 }
  0x6b   : > { %542 = vperm.xlu1 %1522, %v1915_v1  }
  0x6f   : > { %534 = vperm.xlu1 %1522, %v1939_v6  }
  0x73   : > { %530 = vperm.xlu1 %1522, %v1927_v3  }
  0x77   : > { %522 = vperm.xlu1 %1522, %v1965_v10  }
  0x7b   : > { %514 = vperm.xlu1 %1522, %v1960_v9  }
  0xa1   : > { %v232_v13 = vpop.permute.xlu1 %231  ;;  %v237_v14 = vpop.permute.xlu0 %236 }
  0xa2   : > { %v288_v41 = vmul.f32 %v2007_v30, %v237_v14  ;;  %v290_v42 = vmul.f32 %v2015_v34, %v237_v14  ;;  %v284_v46 = vmul.f32 %v2007_v30, %v232_v13  ;;  %v285_v48 = vmul.f32 %v2013_v33, %v232_v13 }
  0xa3   : > { %v286_v53 = vmul.f32 %v2015_v34, %v232_v13  ;;  %v287_v54 = vmul.f32 %v2024_v40, %v232_v13  ;;  %v289_v57 = vmul.f32 %v2013_v33, %v237_v14  ;;  %v291_v58 = vmul.f32 %v2024_v40, %v237_v14 }
  0xa5   : > { %v222_v15 = vpop.permute.xlu0 %221 }
  0xa6   : > { %v318_v16 = vpop.permute.xlu1 %317  ;;  %v276_v37 = vmul.f32 %v2007_v30, %v222_v15  ;;  %v277_v61 = vmul.f32 %v2013_v33, %v222_v15  ;;  %v278_v62 = vmul.f32 %v2015_v34, %v222_v15  ;;  %v279_v63 = vmul.f32 %v2024_v40, %v222_v15 }
  0xa7   : > { %v369_v49 = vmul.f32 %v2009_v31, %v318_v16  ;;  %v370_v50 = vmul.f32 %v2017_v35, %v318_v16  ;;  %v371_v55 = vmul.f32 %v2019_v36, %v318_v16  ;;  %v372_v59 = vmul.f32 %v2028_v43, %v318_v16 }
  0xa9   : > { %v1987_v18 = vpop.permute.xlu0 %216  ;;  %v401_v12 = vadd.f32 %v369_v49, %v284_v46  ;;  %v402_v13 = vadd.f32 %v370_v50, %v285_v48  ;;  %v403_v25 = vadd.f32 %v371_v55, %v286_v53  ;;  %v404_v27 = vadd.f32 %v372_v59, %v287_v54 }
  0xab   : > { %v1989_v19 = vpop.permute.xlu1 %226 }
  0xac   : > { %v280_v14 = vmul.f32 %v2007_v30, %v1989_v19  ;;  %v281_v15 = vmul.f32 %v2013_v33, %v1989_v19 }
  0xae   : > { %v1994_v21 = vpop.permute.xlu0 %430 }
  0xb0   : > { %v1999_v22 = vpop.permute.xlu1 %438 }
  0xb2   : > { %v2004_v28 = vpop.permute.xlu0 %426 }
  0xb5   : > { %v2011_v32 = vpop.permute.xlu1 %309 }
  0xb6   : > { %v361_v38 = vmul.f32 %v2009_v31, %v2011_v32  ;;  %v362_v46 = vmul.f32 %v2017_v35, %v2011_v32  ;;  %v363_v59 = vmul.f32 %v2019_v36, %v2011_v32 }
  0xb7   : > { %v322_v39 = vpop.permute.xlu0 %321 }
  0xb8   : > { %v373_v44 = vmul.f32 %v2009_v31, %v322_v39  ;;  %v375_v45 = vmul.f32 %v2019_v36, %v322_v39  ;;  %v393_v51 = vadd.f32 %v361_v38, %v276_v37  ;;  %v374_v7 = vmul.f32 %v2017_v35, %v322_v39 }
  0xb9   : > { %v376_v16 = vmul.f32 %v2028_v43, %v322_v39  ;;  %v283_v37 = vmul.f32 %v2024_v40, %v1989_v19 }
  0xba   : > { %v435_v47 = vpop.permute.xlu1 %434  ;;  %v405_v56 = vadd.f32 %v373_v44, %v288_v41  ;;  %v407_v60 = vadd.f32 %v375_v45, %v290_v42  ;;  %v457_v4 = vadd.f32 %v2004_v28, %v393_v51  ;;  %v406_v45 = vadd.f32 %v374_v7, %v289_v57 }
  0xbb   : > { %v314_v52 = vpop.permute.xlu0 %313  ;;  %v465_v38 = vadd.f32 %v435_v47, %v401_v12  ;;  %v466_v39 = vadd.f32 %v435_v47, %v402_v13  ;;  %v467_v48 = vadd.f32 %v435_v47, %v403_v25  ;;  %v408_v50 = vadd.f32 %v376_v16, %v291_v58 }
  0xbc   : > { %v365_v0 = vmul.f32 %v2009_v31, %v314_v52  ;;  %v469_v24 = vadd.f32 %v1999_v22, %v405_v56  ;;  %v471_v26 = vadd.f32 %v1999_v22, %v407_v60  ;;  %v366_v29 = vmul.f32 %v2017_v35, %v314_v52 }
  0xbd   : > { %v368_v41 = vmul.f32 %v2028_v43, %v314_v52  ;;  %1529 = vtanh.f32 %v457_v4  ;;  %v367_v44 = vmul.f32 %v2019_v36, %v314_v52  ;;  %v282_v51 = vmul.f32 %v2015_v34, %v1989_v19 }
  0xbe   : > { %v397_v42 = vadd.f32 %v365_v0, %v280_v14  ;;  %1531 = vtanh.f32 %v469_v24  ;;  %v468_v53 = vadd.f32 %v435_v47, %v404_v27  ;;  %v398_v54 = vadd.f32 %v366_v29, %v281_v15 }
  0xbf   : > { %v2048_v23 = vpop.permute.xlu1 %305  ;;  %1533 = vtanh.f32 %v471_v26  ;;  %v298_v55 = vpop.permute.xlu0 %297  ;;  %v364_v56 = vmul.f32 %v2028_v43, %v2011_v32  ;;  %v400_v52 = vadd.f32 %v368_v41, %v283_v37  ;;  %v399_v60 = vadd.f32 %v367_v44, %v282_v51 }
  0xc0   : > { %1535 = vtanh.f32 %v465_v38  ;;  %v461_v57 = vadd.f32 %v1994_v21, %v397_v42  ;;  %v470_v58 = vadd.f32 %v1999_v22, %v406_v45  ;;  %v394_v0 = vadd.f32 %v362_v46, %v277_v61 }
  0xc1   : > { %1537 = vtanh.f32 %v466_v39  ;;  %v472_v19 = vadd.f32 %v1999_v22, %v408_v50  ;;  %v462_v47 = vadd.f32 %v1994_v21, %v398_v54  ;;  %v396_v7 = vadd.f32 %v364_v56, %v279_v63 }
  0xc2   : > { %1539 = vtanh.f32 %v467_v48  ;;  %v464_v12 = vadd.f32 %v1994_v21, %v400_v52  ;;  %v395_v13 = vadd.f32 %v363_v59, %v278_v62  ;;  %v463_v32 = vadd.f32 %v1994_v21, %v399_v60 }
  0xc3   : > { %1541 = vtanh.f32 %v468_v53  ;;  %v2080_v14 = vpop.permute.xlu0 %293  ;;  %v458_v61 = vadd.f32 %v2004_v28, %v394_v0  ;;  %v349_v22 = vmul.f32 %v2009_v31, %v298_v55  ;;  %v272_v16 = vmul.f32 %v2007_v30, %v1987_v18 }
  0xc4   : > { %v2064_v49 = vpop.permute.xlu1 %211  ;;  %1543 = vtanh.f32 %v461_v57  ;;  %v460_v63 = vadd.f32 %v2004_v28, %v396_v7  ;;  %v459_v62 = vadd.f32 %v2004_v28, %v395_v13  ;;  %v357_v21 = vmul.f32 %v2009_v31, %v2048_v23 }
  0xc5   : > { %1545 = vtanh.f32 %v470_v58  ;;  %v273_v26 = vmul.f32 %v2013_v33, %v1987_v18  ;;  %v274_v27 = vmul.f32 %v2015_v34, %v1987_v18  ;;  %v358_v29 = vmul.f32 %v2017_v35, %v2048_v23 }
  0xc6   : > { %1547 = vtanh.f32 %v472_v19  ;;  %v359_v28 = vmul.f32 %v2019_v36, %v2048_v23  ;;  %v350_v38 = vmul.f32 %v2017_v35, %v298_v55  ;;  %v360_v45 = vmul.f32 %v2028_v43, %v2048_v23 }
  0xc7   : > { %1549 = vtanh.f32 %v462_v47  ;;  %v351_v46 = vmul.f32 %v2019_v36, %v298_v55  ;;  %v352_v51 = vmul.f32 %v2028_v43, %v298_v55  ;;  %v389_v56 = vadd.f32 %v357_v21, %v272_v16 }
  0xc8   : > { %1551 = vtanh.f32 %v464_v12  ;;  %v415_v42 = vpop.permute.xlu0 %414  ;;  %v275_v57 = vmul.f32 %v2024_v40, %v1987_v18  ;;  %v268_v59 = vmul.f32 %v2007_v30, %v2064_v49  ;;  %v390_v60 = vadd.f32 %v358_v29, %v273_v26 }
  0xc9   : > { %v2076_v4 = vpop.permute.xlu1 %301  ;;  %1553 = vtanh.f32 %v463_v32  ;;  %v269_v0 = vmul.f32 %v2013_v33, %v2064_v49  ;;  %v391_v47 = vadd.f32 %v359_v28, %v274_v27  ;;  %v270_v21 = vmul.f32 %v2015_v34, %v2064_v49 }
  0xca   : > { %v2091_v15 = vpop.eup %1529  ;;  %1555 = vtanh.f32 %v458_v61  ;;  %v353_v12 = vmul.f32 %v2009_v31, %v2076_v4  ;;  %v392_v32 = vadd.f32 %v360_v45, %v275_v57  ;;  %v355_v16 = vmul.f32 %v2019_v36, %v2076_v4 }
  0xcb   : > { %v1532_v37 = vpop.eup %1531  ;;  %1557 = vtanh.f32 %v460_v63  ;;  %v356_v28 = vmul.f32 %v2028_v43, %v2076_v4  ;;  %v346_v45 = vmul.f32 %v2017_v35, %v2080_v14  ;;  %v347_v57 = vmul.f32 %v2019_v36, %v2080_v14 }
  0xcc   : > { %v1534_v44 = vpop.eup %1533  ;;  %1559 = vtanh.f32 %v459_v62 }
  0xcd   : > { %v1536_v50 = vpop.eup %1535 }
  0xce   : > { %v207_v24 = vpop.permute.xlu1 %206  ;;  %v1538_v52 = vpop.eup %1537 }
  0xcf   : > { %v264_v25 = vmul.f32 %v2007_v30, %v207_v24  ;;  %v265_v41 = vmul.f32 %v2013_v33, %v207_v24  ;;  %v266_v48 = vmul.f32 %v2015_v34, %v207_v24  ;;  %v267_v53 = vmul.f32 %v2024_v40, %v207_v24  ;;  %v1540_v58 = vpop.eup %1539 }
  0xd0   : > { %v1542_v7 = vpop.eup %1541 }
  0xd1   : > { %v381_v39 = vadd.f32 %v349_v22, %v264_v25  ;;  %v382_v19 = vadd.f32 %v350_v38, %v265_v41  ;;  %v383_v13 = vadd.f32 %v351_v46, %v266_v48  ;;  %v1544_v18 = vpop.eup %1543  ;;  %v354_v22 = vmul.f32 %v2017_v35, %v2076_v4 }
  0xd2   : > { %v384_v63 = vadd.f32 %v352_v51, %v267_v53  ;;  %v1546_v62 = vpop.eup %1545  ;;  %v271_v25 = vmul.f32 %v2024_v40, %v2064_v49  ;;  %v345_v38 = vmul.f32 %v2009_v31, %v2080_v14  ;;  %v385_v46 = vadd.f32 %v353_v12, %v268_v59 }
  0xd3   : > { %v423_v54 = vpop.permute.xlu1 %422  ;;  %v445_v23 = vadd.f32 %v415_v42, %v381_v39  ;;  %v1548_v29 = vpop.eup %1547  ;;  %586 = vmatprep.subr.mxu0 %v1546_v62  ;;  %v446_v41 = vadd.f32 %v415_v42, %v382_v19  ;;  %v447_v49 = vadd.f32 %v415_v42, %v383_v13  ;;  %v386_v4 = vadd.f32 %v354_v22, %v269_v0 }
  0xd4   : > { %v453_v55 = vadd.f32 %v423_v54, %v389_v56  ;;  %v454_v61 = vadd.f32 %v423_v54, %v390_v60  ;;  %v455_v24 = vadd.f32 %v423_v54, %v391_v47  ;;  %v456_v26 = vadd.f32 %v423_v54, %v392_v32  ;;  %v1550_v39 = vpop.eup %1549  ;;  %699 = vmatprep.subr.mxu1 %v1548_v29 }
  0xd5   : > { %1561 = vtanh.f32 %v445_v23  ;;  %587 = vmatpush1.msra.mxu0 %v1532_v37  ;;  %v1552_v48 = vpop.eup %1551  ;;  %700 = vmatpush1.msra.mxu1 %v1534_v44  ;;  %v448_v51 = vadd.f32 %v415_v42, %v384_v63  ;;  %v387_v53 = vadd.f32 %v355_v16, %v270_v21 }
  0xd6   : > { %1563 = vtanh.f32 %v453_v55  ;;  %588 = vmatprep.subr.mxu0 %v1538_v52  ;;  %v1554_v54 = vpop.eup %1553  ;;  %701 = vmatprep.subr.mxu1 %v1542_v7  ;;  %v388_v52 = vadd.f32 %v356_v28, %v271_v25  ;;  %v506_v28 = vld [vmem:[#allocation2 + $0x8] sm:$0xff] }
  0xd7   : > { %1565 = vtanh.f32 %v454_v61  ;;  %589 = vmatpush1.msra.mxu0 %v1536_v50  ;;  %v1556_v56 = vpop.eup %1555  ;;  %702 = vmatpush1.msra.mxu1 %v1540_v58 }
  0xd8   : > { %v202_v27 = vpop.permute.xlu1 %201  ;;  %1567 = vtanh.f32 %v455_v24  ;;  %590 = vmatprep.subr.mxu0 %v1550_v39  ;;  %703 = vmatprep.subr.mxu1 %v1552_v48  ;;  %v509_v39 = vld [vmem:[#allocation2 + $0x20] sm:$0xff]  ;;  %v1821_v48 = vmov 4  }
  0xd9   : > { %1569 = vtanh.f32 %v456_v26  ;;  %v260_v31 = vmul.f32 %v2007_v30, %v202_v27  ;;  %v261_v37 = vmul.f32 %v2013_v33, %v202_v27  ;;  %v262_v35 = vmul.f32 %v2015_v34, %v202_v27  ;;  %591 = vmatpush1.msra.mxu0 %v1544_v18  ;;  %v1558_v33 = vpop.eup %1557  ;;  %704 = vmatpush1.msra.mxu1 %v1554_v54  ;;  %v505_v26 = vld [vmem:[#allocation2] sm:$0xff] }
  0xda   : > { %1571 = vtanh.f32 %v446_v41  ;;  %v263_v42 = vmul.f32 %v2024_v40, %v202_v27  ;;  %v348_v34 = vmul.f32 %v2028_v43, %v2080_v14  ;;  %592 = vmatprep.subr.mxu0 %v1556_v56  ;;  %v1560_v23 = vpop.eup %1559  ;;  %705 = vmatprep.subr.mxu1 %v1558_v33  ;;  %v508_v41 = vld [vmem:[#allocation2 + $0x18] sm:$0xff]  ;;  %v198_v54 = vld [vmem:[%s2367_s2] sm:$0x1] }
  0xdb   : > { %1573 = vtanh.f32 %v447_v49  ;;  %593 = vmatpush1.msra.mxu0 %v2091_v15  ;;  %v377_v40 = vadd.f32 %v345_v38, %v260_v31  ;;  %v378_v60 = vadd.f32 %v346_v45, %v261_v37  ;;  %v379_v58 = vadd.f32 %v347_v57, %v262_v35  ;;  %706 = vmatpush1.msra.mxu1 %v1560_v23  ;;  %v507_v38 = vld [vmem:[#allocation2 + $0x10] sm:$0xff]  ;;  %v510_v45 = vld [vmem:[#allocation2 + $0x28] sm:$0xff] }
  0xdc   : > { %1575 = vtanh.f32 %v448_v51  ;;  %v380_v19 = vadd.f32 %v348_v34, %v263_v42  ;;  %v511_v49 = vld [vmem:[#allocation2 + $0x30] sm:$0xff]  ;;  %1525 = vset.pattern.permute.xlu1 %v1821_v48  ;;  %1524 = vset.pattern.permute.xlu0 %v1821_v48  ;;  %v1822_v51 = vmov 5  }
  0xdd   : > { %v419_v44 = vpop.permute.xlu1 %418  ;;  %842 = vperm.xlu1 %1525, %v1953_v8   ;;  %838 = vperm.xlu0 %1524, %v1960_v9  }
  0xde   : > { %v449_v50 = vadd.f32 %v419_v44, %v385_v46  ;;  %v450_v30 = vadd.f32 %v419_v44, %v386_v4  ;;  %v451_v59 = vadd.f32 %v419_v44, %v387_v53  ;;  %v452_v36 = vadd.f32 %v419_v44, %v388_v52  ;;  %v512_v46 = vld [vmem:[#allocation2 + $0x38] sm:$0xff] }
  0xe0   : > { %1577 = vtanh.f32 %v449_v50 }
  0xe1   : > { %1579 = vtanh.f32 %v450_v30  ;;  %v411_v0 = vpop.permute.xlu1 %410  ;;  %846 = vperm.xlu1 %1525, %v1965_v10   ;;  %850 = vperm.xlu0 %1524, %v1934_v5  }
  0xe2   : > { %1581 = vtanh.f32 %v451_v59  ;;  %v441_v47 = vadd.f32 %v411_v0, %v377_v40  ;;  %v442_v55 = vadd.f32 %v411_v0, %v378_v60  ;;  %v443_v43 = vadd.f32 %v411_v0, %v379_v58  ;;  %v1562_v7 = vpop.eup %1561 }
  0xe3   : > { %1583 = vtanh.f32 %v452_v36  ;;  %v444_v14 = vadd.f32 %v411_v0, %v380_v19  ;;  %v1564_v12 = vpop.eup %1563 }
  0xe4   : > { %1585 = vtanh.f32 %v441_v47  ;;  %v1566_v15 = vpop.eup %1565 }
  0xe5   : > { %1587 = vtanh.f32 %v442_v55  ;;  %v1568_v13 = vpop.eup %1567  ;;  %594 = vmatprep.subr.mxu0 %v1566_v15  ;;  %854 = vperm.xlu1 %1525, %v1927_v3  }
  0xe6   : > { %1589 = vtanh.f32 %v443_v43  ;;  %v1570_v32 = vpop.eup %1569  ;;  %595 = vmatpush1.msra.mxu0 %v1564_v12  ;;  %858 = vperm.xlu0 %1524, %v1939_v6   ;;  %v2182_v4 = vpop.permute.xlu1 %542 }
  0xe7   : > { %1591 = vtanh.f32 %v444_v14  ;;  %v1572_v61 = vpop.eup %1571  ;;  %707 = vmatprep.subr.mxu1 %v1570_v32 }
  0xe8   : > { %v1574_v18 = vpop.eup %1573  ;;  %708 = vmatpush1.msra.mxu1 %v1568_v13 }
  0xe9   : > { %v1576_v22 = vpop.eup %1575  ;;  %862 = vperm.xlu1 %1525, %v1920_v2  }
  0xea   : > { %866 = vperm.xlu0 %1524, %v1915_v1   ;;  %v2188_v53 = vpop.permute.xlu1 %534 }
  0xed   : > { %v1578_v16 = vpop.eup %1577  ;;  %1526 = vset.pattern.permute.xlu1 %v1822_v51 }
  0xee   : > { %v1580_v63 = vpop.eup %1579  ;;  %1527 = vset.pattern.permute.xlu0 %v1822_v51  ;;  %1152 = vperm.xlu1 %1526, %v1960_v9   ;;  %v1823_v9 = vmov 6  }
  0xef   : > { %v1582_v24 = vpop.eup %1581  ;;  %596 = vmatprep.subr.mxu0 %v1580_v63  ;;  %1156 = vperm.xlu0 %1527, %v1953_v8   ;;  %v2194_v8 = vpop.permute.xlu1 %530 }
  0xf0   : > { %v1584_v62 = vpop.eup %1583  ;;  %597 = vmatpush1.msra.mxu0 %v1578_v16 }
  0xf1   : > { %v1586_v21 = vpop.eup %1585  ;;  %709 = vmatprep.subr.mxu1 %v1584_v62  ;;  %598 = vmatprep.subr.mxu0 %v1572_v61 }
  0xf2   : > { %v1588_v25 = vpop.eup %1587  ;;  %710 = vmatpush1.msra.mxu1 %v1582_v24  ;;  %599 = vmatpush1.msra.mxu0 %v1562_v7 }
  0xf3   : > { %v1590_v27 = vpop.eup %1589  ;;  %711 = vmatprep.subr.mxu1 %v1576_v22  ;;  %600 = vmatprep.subr.mxu0 %v1588_v25  ;;  %v2203_v35 = vpop.permute.xlu1 %522 }
  0xf4   : > { %v1592_v29 = vpop.eup %1591  ;;  %712 = vmatpush1.msra.mxu1 %v1574_v18  ;;  %601 = vmatpush1.msra.mxu0 %v1586_v21 }
  0xf5   : > { %713 = vmatprep.subr.mxu1 %v1592_v29  ;;  %1406 = vmatmul.mubr.msk.f32.vlgmr.msra.gmra.mxu0 %vm545_vm0, %v505_v26 }
  0xf6   : > { %714 = vmatpush1.msra.mxu1 %v1590_v27  ;;  %640 = vmatprep.mubr.f32.mxu0 %v1819_v11 }
  0xf7   : > { %1414 = vmatmul.mubr.msk.f32.vlgmr.msra.gmra.mxu1 %vm545_vm0, %v505_v26  ;;  %1160 = vperm.xlu1 %1526, %v1965_v10   ;;  %v2213_v50 = vpop.permute.xlu1 %514 }
  0xf8   : > { %753 = vmatprep.mubr.f32.mxu1 %v1819_v11  ;;  %1168 = vperm.xlu0 %1527, %v1927_v3   ;;  %v2197_v3 = vpop.permute.xlu0 %538 }
  0xf9   : > { %1407 = vmatmul.mubr.msk.f32.gmra.mxu0 %vm545_vm0, %v506_v28 }
  0xfa   : > { %646 = vmatprep.mubr.f32.mxu0 %v1819_v11 }
  0xfb   : > { %1415 = vmatmul.mubr.msk.f32.gmra.mxu1 %vm545_vm0, %v506_v28  ;;  %1164 = vperm.xlu1 %1526, %v1934_v5  }
  0xfc   : > { %759 = vmatprep.mubr.f32.mxu1 %v1819_v11  ;;  %1176 = vperm.xlu0 %1527, %v1920_v2   ;;  %v2207_v57 = vpop.permute.xlu0 %526 }
  0xfd   : > { %1408 = vmatmul.mubr.msk.f32.gmra.mxu0 %vm545_vm0, %v507_v38 }
  0xfe   : > { %652 = vmatprep.mubr.f32.mxu0 %v1819_v11 }
  0xff   : > { %1416 = vmatmul.mubr.msk.f32.gmra.mxu1 %vm545_vm0, %v507_v38  ;;  %1172 = vperm.xlu1 %1526, %v1939_v6  }
 0x100   : > { %765 = vmatprep.mubr.f32.mxu1 %v1819_v11  ;;  %1528 = vset.pattern.permute.xlu0 %v1823_v9  ;;  %v2217_v33 = vpop.permute.xlu0 %518 }
 0x101   : > { %1409 = vmatmul.mubr.msk.f32.gmra.mxu0 %vm545_vm0, %v508_v41  ;;  %1269 = vperm.xlu0 %1528, %v198_v54  }
 0x102   : > { %658 = vmatprep.mubr.f32.mxu0 %v1819_v11 }
 0x103   : > { %1417 = vmatmul.mubr.msk.f32.gmra.mxu1 %vm545_vm0, %v508_v41  ;;  %1180 = vperm.xlu1 %1526, %v1915_v1  }
 0x104   : > { %771 = vmatprep.mubr.f32.mxu1 %v1819_v11 }
 0x105   : > { %1410 = vmatmul.mubr.msk.f32.gmra.mxu0 %vm545_vm0, %v509_v39 }
 0x106   : > { %664 = vmatprep.mubr.f32.mxu0 %v1819_v11 }
 0x107   : > { %1418 = vmatmul.mubr.msk.f32.gmra.mxu1 %vm545_vm0, %v509_v39 }
 0x108   : > { %777 = vmatprep.mubr.f32.mxu1 %v1819_v11 }
 0x109   : > { %1411 = vmatmul.mubr.msk.f32.gmra.mxu0 %vm545_vm0, %v510_v45 }
 0x10a   : > { %670 = vmatprep.mubr.f32.mxu0 %v1819_v11 }
 0x10b   : > { %1419 = vmatmul.mubr.msk.f32.gmra.mxu1 %vm545_vm0, %v510_v45 }
 0x10c   : > { %783 = vmatprep.mubr.f32.mxu1 %v1819_v11 }
 0x10d   : > { %1412 = vmatmul.mubr.msk.f32.gmra.mxu0 %vm545_vm0, %v511_v49 }
 0x10e   : > { %676 = vmatprep.mubr.f32.mxu0 %v1819_v11 }
 0x10f   : > { %1420 = vmatmul.mubr.msk.f32.gmra.mxu1 %vm545_vm0, %v511_v49 }
 0x110   : > { %789 = vmatprep.mubr.f32.mxu1 %v1819_v11 }
 0x111   : > { %1413 = vmatmul.mubr.msk.f32.gmra.mxu0 %vm545_vm0, %v512_v46 }
 0x112   : > { %957 = vmatprep.mubr.f32.mxu0 %v1819_v11 }
 0x113   : > { %1421 = vmatmul.mubr.msk.f32.gmra.mxu1 %vm545_vm0, %v512_v46 }
 0x114   : > { %1070 = vmatprep.mubr.f32.mxu1 %v1819_v11 }
 0x1b5   : > { %v636_v10 = vpop.f32.mrf.mxu0 }
 0x1b6   : > { %v637_v23 = vadd.f32 %v636_v10, %v2213_v50 }
 0x1b7   : > { %v2199_v5 = vpop.f32.mrf.mxu1  ;;  %v638_v2 = vpop.f32.mrf.mxu0 }
 0x1b8   : > { %v639_v40 = vadd.f32 %v638_v2, %v2213_v50  ;;  %1593 = vtanh.f32 %v637_v23 }
 0x1b9   : > { %v2201_v31 = vpop.f32.mrf.mxu1  ;;  %v642_v37 = vpop.f32.mrf.mxu0 }
 0x1ba   : > { %v643_v0 = vadd.f32 %v642_v37, %v2217_v33  ;;  %1595 = vtanh.f32 %v639_v40 }
 0x1bb   : > { %v2205_v56 = vpop.f32.mrf.mxu1  ;;  %v644_v6 = vpop.f32.mrf.mxu0 }
 0x1bc   : > { %v645_v19 = vadd.f32 %v644_v6, %v2217_v33  ;;  %1597 = vtanh.f32 %v643_v0 }
 0x1bd   : > { %v2209_v42 = vpop.f32.mrf.mxu1  ;;  %v648_v44 = vpop.f32.mrf.mxu0 }
 0x1be   : > { %v649_v43 = vadd.f32 %v648_v44, %v2203_v35  ;;  %1599 = vtanh.f32 %v645_v19 }
 0x1bf   : > { %v2211_v52 = vpop.f32.mrf.mxu1  ;;  %v650_v1 = vpop.f32.mrf.mxu0 }
 0x1c0   : > { %v651_v14 = vadd.f32 %v650_v1, %v2203_v35  ;;  %1601 = vtanh.f32 %v649_v43 }
 0x1c1   : > { %v2215_v30 = vpop.f32.mrf.mxu1  ;;  %v654_v59 = vpop.f32.mrf.mxu0 }
 0x1c2   : > { %v655_v15 = vadd.f32 %v654_v59, %v2207_v57  ;;  %1603 = vtanh.f32 %v651_v14  ;;  %v764_v19 = vadd.f32 %v2215_v30, %v2203_v35  ;;  %v752_v30 = vadd.f32 %v2201_v31, %v2213_v50 }
 0x1c3   : > { %v2219_v34 = vpop.f32.mrf.mxu1  ;;  %v656_v36 = vpop.f32.mrf.mxu0 }
 0x1c4   : > { %v657_v13 = vadd.f32 %v656_v36, %v2207_v57  ;;  %1605 = vtanh.f32 %v655_v15  ;;  %v768_v0 = vadd.f32 %v2219_v34, %v2207_v57 }
 0x1c5   : > { %v2223_v60 = vpop.f32.mrf.mxu1  ;;  %v660_v58 = vpop.f32.mrf.mxu0 }
 0x1c6   : > { %v661_v18 = vadd.f32 %v660_v58, %v2194_v8  ;;  %1607 = vtanh.f32 %v657_v13  ;;  %v2239_v49 = vpop.eup %1593  ;;  %v770_v40 = vadd.f32 %v2223_v60, %v2207_v57  ;;  %v758_v60 = vadd.f32 %v2209_v42, %v2217_v33 }
 0x1c7   : > { %v773_v47 = vpop.f32.mrf.mxu1  ;;  %v662_v55 = vpop.f32.mrf.mxu0  ;;  %v756_v57 = vadd.f32 %v2205_v56, %v2217_v33 }
 0x1c8   : > { %v663_v22 = vadd.f32 %v662_v55, %v2194_v8  ;;  %1609 = vtanh.f32 %v661_v18  ;;  %v2242_v51 = vpop.eup %1595  ;;  %v774_v23 = vadd.f32 %v773_v47, %v2194_v8 }
 0x1c9   : > { %v775_v7 = vpop.f32.mrf.mxu1  ;;  %v666_v12 = vpop.f32.mrf.mxu0 }
 0x1ca   : > { %v667_v24 = vadd.f32 %v666_v12, %v2188_v53  ;;  %1611 = vtanh.f32 %v663_v22  ;;  %v2246_v10 = vpop.eup %1597  ;;  %v776_v36 = vadd.f32 %v775_v7, %v2194_v8  ;;  %v762_v8 = vadd.f32 %v2211_v52, %v2203_v35 }
 0x1cb   : > { %v779_v32 = vpop.f32.mrf.mxu1  ;;  %v668_v61 = vpop.f32.mrf.mxu0  ;;  %v750_v35 = vadd.f32 %v2199_v5, %v2213_v50 }
 0x1cc   : > { %v669_v62 = vadd.f32 %v668_v61, %v2188_v53  ;;  %1613 = vtanh.f32 %v667_v24  ;;  %v2249_v37 = vpop.eup %1599  ;;  %v780_v1 = vadd.f32 %v779_v32, %v2188_v53 }
 0x1cd   : > { %v781_v16 = vpop.f32.mrf.mxu1  ;;  %v672_v63 = vpop.f32.mrf.mxu0 }
 0x1ce   : > { %v673_v26 = vadd.f32 %v672_v63, %v2197_v3  ;;  %1615 = vtanh.f32 %v669_v62  ;;  %v782_v6 = vadd.f32 %v781_v16, %v2188_v53  ;;  %v2252_v44 = vpop.eup %1601  ;;  %v829_v16 = vld [vmem:[#allocation2 + $0x40] sm:$0xff]  ;;  %v830_v62 = vld [vmem:[#allocation2 + $0x48] sm:$0xff] }
 0x1cf   : > { %v785_v21 = vpop.f32.mrf.mxu1  ;;  %v674_v25 = vpop.f32.mrf.mxu0 }
 0x1d0   : > { %v675_v27 = vadd.f32 %v674_v25, %v2197_v3  ;;  %1617 = vtanh.f32 %v673_v26  ;;  %v786_v2 = vadd.f32 %v785_v21, %v2197_v3  ;;  %v2255_v59 = vpop.eup %1603  ;;  %v831_v21 = vld [vmem:[#allocation2 + $0x50] sm:$0xff]  ;;  %v832_v25 = vld [vmem:[#allocation2 + $0x58] sm:$0xff]  ;;  %v833_v26 = vld [vmem:[#allocation2 + $0x60] sm:$0xff] }
 0x1d1   : > { %v787_v29 = vpop.f32.mrf.mxu1  ;;  %v678_v28 = vpop.f32.mrf.mxu0 }
 0x1d2   : > { %v679_v38 = vadd.f32 %v678_v28, %v2182_v4  ;;  %1619 = vtanh.f32 %v675_v27  ;;  %v788_v54 = vadd.f32 %v787_v29, %v2197_v3  ;;  %v834_v27 = vld [vmem:[#allocation2 + $0x68] sm:$0xff]  ;;  %v835_v29 = vld [vmem:[#allocation2 + $0x70] sm:$0xff]  ;;  %v836_v28 = vld [vmem:[#allocation2 + $0x78] sm:$0xff] }
 0x1d3   : > { %v791_v41 = vpop.f32.mrf.mxu1  ;;  %v680_v39 = vpop.f32.mrf.mxu0 }
 0x1d4   : > { %v681_v45 = vadd.f32 %v680_v39, %v2182_v4  ;;  %v792_v46 = vadd.f32 %v791_v41, %v2182_v4  ;;  %1621 = vtanh.f32 %v679_v38  ;;  %v843_v38 = vpop.permute.xlu1 %842  ;;  %v839_v41 = vpop.permute.xlu0 %838 }
 0x1d5   : > { %v793_v48 = vpop.f32.mrf.mxu1 }
 0x1d6   : > { %v794_v9 = vadd.f32 %v793_v48, %v2182_v4  ;;  %1623 = vtanh.f32 %v681_v45  ;;  %v1606_v4 = vpop.eup %1605 }
 0x1d7   : > { %v1608_v3 = vpop.eup %1607 }
 0x1d8   : > { %1625 = vtanh.f32 %v794_v9  ;;  %v1610_v58 = vpop.eup %1609 }
 0x1d9   : > { %1627 = vtanh.f32 %v792_v46  ;;  %v1612_v53 = vpop.eup %1611 }
 0x1da   : > { %1629 = vtanh.f32 %v788_v54  ;;  %v1614_v55 = vpop.eup %1613 }
 0x1db   : > { %1631 = vtanh.f32 %v786_v2  ;;  %v1616_v47 = vpop.eup %1615 }
 0x1dc   : > { %1633 = vtanh.f32 %v782_v6 }
 0x1dd   : > { %1635 = vtanh.f32 %v780_v1  ;;  %v1618_v43 = vpop.eup %1617 }
 0x1de   : > { %1637 = vtanh.f32 %v776_v36 }
 0x1df   : > { %1639 = vtanh.f32 %v774_v23  ;;  %v1620_v34 = vpop.eup %1619 }
 0x1e0   : > { %1641 = vtanh.f32 %v770_v40 }
 0x1e1   : > { %1643 = vtanh.f32 %v768_v0  ;;  %v1622_v14 = vpop.eup %1621 }
 0x1e2   : > { %1645 = vtanh.f32 %v764_v19 }
 0x1e3   : > { %1647 = vtanh.f32 %v762_v8  ;;  %v1624_v52 = vpop.eup %1623 }
 0x1e4   : > { %1649 = vtanh.f32 %v758_v60  ;;  %909 = vmatprep.subr.mxu0 %v1624_v52 }
 0x1e5   : > { %v1626_v7 = vpop.eup %1625  ;;  %1651 = vtanh.f32 %v756_v57  ;;  %910 = vmatpush1.msra.mxu0 %v1622_v14 }
 0x1e6   : > { %v1628_v42 = vpop.eup %1627  ;;  %1653 = vtanh.f32 %v752_v30  ;;  %1022 = vmatprep.subr.mxu1 %v1626_v7  ;;  %911 = vmatprep.subr.mxu0 %v1620_v34 }
 0x1e7   : > { %v1630_v56 = vpop.eup %1629  ;;  %1655 = vtanh.f32 %v750_v35  ;;  %1023 = vmatpush1.msra.mxu1 %v1628_v42  ;;  %912 = vmatpush1.msra.mxu0 %v1618_v43 }
 0x1e8   : > { %v1632_v31 = vpop.eup %1631  ;;  %1024 = vmatprep.subr.mxu1 %v1630_v56  ;;  %913 = vmatprep.subr.mxu0 %v1616_v47 }
 0x1e9   : > { %v1634_v33 = vpop.eup %1633  ;;  %1025 = vmatpush1.msra.mxu1 %v1632_v31  ;;  %914 = vmatpush1.msra.mxu0 %v1614_v55 }
 0x1ea   : > { %v1636_v5 = vpop.eup %1635  ;;  %1026 = vmatprep.subr.mxu1 %v1634_v33  ;;  %915 = vmatprep.subr.mxu0 %v1612_v53  ;;  %v851_v53 = vpop.permute.xlu0 %850 }
 0x1eb   : > { %v1638_v50 = vpop.eup %1637  ;;  %1027 = vmatpush1.msra.mxu1 %v1636_v5  ;;  %916 = vmatpush1.msra.mxu0 %v1610_v58 }
 0x1ec   : > { %v1640_v12 = vpop.eup %1639  ;;  %1028 = vmatprep.subr.mxu1 %v1638_v50  ;;  %917 = vmatprep.subr.mxu0 %v1608_v3 }
 0x1ed   : > { %v1642_v15 = vpop.eup %1641  ;;  %1029 = vmatpush1.msra.mxu1 %v1640_v12  ;;  %918 = vmatpush1.msra.mxu0 %v1606_v4 }
 0x1ee   : > { %v1644_v13 = vpop.eup %1643  ;;  %1030 = vmatprep.subr.mxu1 %v1642_v15  ;;  %919 = vmatprep.subr.mxu0 %v2255_v59  ;;  %v859_v56 = vpop.permute.xlu0 %858 }
 0x1ef   : > { %v1646_v32 = vpop.eup %1645  ;;  %1031 = vmatpush1.msra.mxu1 %v1644_v13  ;;  %920 = vmatpush1.msra.mxu0 %v2252_v44 }
 0x1f0   : > { %v1648_v61 = vpop.eup %1647  ;;  %1032 = vmatprep.subr.mxu1 %v1646_v32  ;;  %921 = vmatprep.subr.mxu0 %v2249_v37 }
 0x1f1   : > { %v1650_v18 = vpop.eup %1649  ;;  %1033 = vmatpush1.msra.mxu1 %v1648_v61  ;;  %922 = vmatpush1.msra.mxu0 %v2246_v10 }
 0x1f2   : > { %v1652_v22 = vpop.eup %1651  ;;  %1034 = vmatprep.subr.mxu1 %v1650_v18  ;;  %923 = vmatprep.subr.mxu0 %v2242_v51  ;;  %v847_v51 = vpop.permute.xlu1 %846 }
 0x1f3   : > { %v1654_v63 = vpop.eup %1653  ;;  %1035 = vmatpush1.msra.mxu1 %v1652_v22  ;;  %924 = vmatpush1.msra.mxu0 %v2239_v49 }
 0x1f4   : > { %v1656_v24 = vpop.eup %1655  ;;  %1036 = vmatprep.subr.mxu1 %v1654_v63  ;;  %1422 = vmatmul.mubr.msk.f32.vlgmr.msra.gmra.mxu0 %vm545_vm0, %v829_v16 }
 0x1f5   : > { %1037 = vmatpush1.msra.mxu1 %v1656_v24  ;;  %963 = vmatprep.mubr.f32.mxu0 %v1819_v11 }
 0x1f6   : > { %1430 = vmatmul.mubr.msk.f32.vlgmr.msra.gmra.mxu1 %vm545_vm0, %v829_v16  ;;  %v855_v23 = vpop.permute.xlu1 %854 }
 0x1f7   : > { %1076 = vmatprep.mubr.f32.mxu1 %v1819_v11 }
 0x1f8   : > { %1423 = vmatmul.mubr.msk.f32.gmra.mxu0 %vm545_vm0, %v830_v62 }
 0x1f9   : > { %969 = vmatprep.mubr.f32.mxu0 %v1819_v11 }
 0x1fa   : > { %1431 = vmatmul.mubr.msk.f32.gmra.mxu1 %vm545_vm0, %v830_v62  ;;  %v863_v30 = vpop.permute.xlu1 %862 }
 0x1fb   : > { %1082 = vmatprep.mubr.f32.mxu1 %v1819_v11 }
 0x1fc   : > { %1424 = vmatmul.mubr.msk.f32.gmra.mxu0 %vm545_vm0, %v831_v21 }
 0x1fd   : > { %975 = vmatprep.mubr.f32.mxu0 %v1819_v11 }
 0x1fe   : > { %1432 = vmatmul.mubr.msk.f32.gmra.mxu1 %vm545_vm0, %v831_v21  ;;  %v2319_v63 = vpop.permute.xlu1 %1152 }
 0x1ff   : > { %1088 = vmatprep.mubr.f32.mxu1 %v1819_v11 }
 0x200   : > { %1425 = vmatmul.mubr.msk.f32.gmra.mxu0 %vm545_vm0, %v832_v25 }
 0x201   : > { %981 = vmatprep.mubr.f32.mxu0 %v1819_v11 }
 0x202   : > { %1433 = vmatmul.mubr.msk.f32.gmra.mxu1 %vm545_vm0, %v832_v25 }
 0x203   : > { %1094 = vmatprep.mubr.f32.mxu1 %v1819_v11 }
 0x204   : > { %1426 = vmatmul.mubr.msk.f32.gmra.mxu0 %vm545_vm0, %v833_v26 }
 0x205   : > { %987 = vmatprep.mubr.f32.mxu0 %v1819_v11 }
 0x206   : > { %1434 = vmatmul.mubr.msk.f32.gmra.mxu1 %vm545_vm0, %v833_v26 }
 0x207   : > { %1100 = vmatprep.mubr.f32.mxu1 %v1819_v11 }
 0x208   : > { %1427 = vmatmul.mubr.msk.f32.gmra.mxu0 %vm545_vm0, %v834_v27 }
 0x209   : > { %993 = vmatprep.mubr.f32.mxu0 %v1819_v11 }
 0x20a   : > { %1435 = vmatmul.mubr.msk.f32.gmra.mxu1 %vm545_vm0, %v834_v27 }
 0x20b   : > { %1106 = vmatprep.mubr.f32.mxu1 %v1819_v11 }
 0x20c   : > { %1428 = vmatmul.mubr.msk.f32.gmra.mxu0 %vm545_vm0, %v835_v29 }
 0x20d   : > { %999 = vmatprep.mubr.f32.mxu0 %v1819_v11 }
 0x20e   : > { %1436 = vmatmul.mubr.msk.f32.gmra.mxu1 %vm545_vm0, %v835_v29  ;;  %v867_v29 = vpop.permute.xlu0 %866 }
 0x20f   : > { %1112 = vmatprep.mubr.f32.mxu1 %v1819_v11 }
 0x210   : > { %1429 = vmatmul.mubr.msk.f32.gmra.mxu0 %vm545_vm0, %v836_v28 }
 0x212   : > { %1437 = vmatmul.mubr.msk.f32.gmra.mxu1 %vm545_vm0, %v836_v28 }
 0x2b4   : > { %v959_v39 = vpop.f32.mrf.mxu0 }
 0x2b5   : > { %v960_v49 = vadd.f32 %v959_v39, %v839_v41 }
 0x2b6   : > { %v1072_v45 = vpop.f32.mrf.mxu1  ;;  %v961_v46 = vpop.f32.mrf.mxu0 }
 0x2b7   : > { %v1073_v48 = vadd.f32 %v1072_v45, %v839_v41  ;;  %v962_v9 = vadd.f32 %v961_v46, %v839_v41  ;;  %1657 = vtanh.f32 %v960_v49 }
 0x2b8   : > { %v1074_v54 = vpop.f32.mrf.mxu1  ;;  %v965_v10 = vpop.f32.mrf.mxu0 }
 0x2b9   : > { %v1075_v2 = vadd.f32 %v1074_v54, %v839_v41  ;;  %1659 = vtanh.f32 %v1073_v48  ;;  %v966_v11 = vadd.f32 %v965_v10, %v843_v38 }
 0x2ba   : > { %v1078_v37 = vpop.f32.mrf.mxu1  ;;  %1661 = vtanh.f32 %v962_v9  ;;  %v967_v6 = vpop.f32.mrf.mxu0 }
 0x2bb   : > { %v1079_v44 = vadd.f32 %v1078_v37, %v843_v38  ;;  %1663 = vtanh.f32 %v1075_v2  ;;  %v968_v59 = vadd.f32 %v967_v6, %v843_v38  ;;  %v1161_v2 = vpop.permute.xlu1 %1160 }
 0x2bc   : > { %v1080_v1 = vpop.f32.mrf.mxu1  ;;  %1665 = vtanh.f32 %v966_v11  ;;  %v971_v36 = vpop.f32.mrf.mxu0 }
 0x2bd   : > { %v1081_v4 = vadd.f32 %v1080_v1, %v843_v38  ;;  %1667 = vtanh.f32 %v1079_v44  ;;  %v972_v40 = vadd.f32 %v971_v36, %v847_v51  ;;  %v1157_v36 = vpop.permute.xlu0 %1156 }
 0x2be   : > { %v1084_v3 = vpop.f32.mrf.mxu1  ;;  %1669 = vtanh.f32 %v968_v59  ;;  %v973_v58 = vpop.f32.mrf.mxu0 }
 0x2bf   : > { %1671 = vtanh.f32 %v1081_v4  ;;  %v1085_v0 = vadd.f32 %v1084_v3, %v847_v51  ;;  %v974_v55 = vadd.f32 %v973_v58, %v847_v51 }
 0x2c0   : > { %v1086_v19 = vpop.f32.mrf.mxu1  ;;  %1673 = vtanh.f32 %v972_v40  ;;  %v977_v8 = vpop.f32.mrf.mxu0 }
 0x2c1   : > { %v1087_v47 = vadd.f32 %v1086_v19, %v847_v51  ;;  %1675 = vtanh.f32 %v1085_v0  ;;  %v978_v43 = vadd.f32 %v977_v8, %v851_v53 }
 0x2c2   : > { %v1090_v60 = vpop.f32.mrf.mxu1  ;;  %1677 = vtanh.f32 %v974_v55  ;;  %v979_v57 = vpop.f32.mrf.mxu0 }
 0x2c3   : > { %1679 = vtanh.f32 %v1087_v47  ;;  %v1091_v34 = vadd.f32 %v1090_v60, %v851_v53  ;;  %v980_v35 = vadd.f32 %v979_v57, %v851_v53  ;;  %v1165_v57 = vpop.permute.xlu1 %1164 }
 0x2c4   : > { %v1092_v14 = vpop.f32.mrf.mxu1  ;;  %1681 = vtanh.f32 %v978_v43  ;;  %v2311_v52 = vpop.eup %1657 }
 0x2c5   : > { %v983_v7 = vpop.f32.mrf.mxu0  ;;  %v1093_v42 = vadd.f32 %v1092_v14, %v851_v53  ;;  %1683 = vtanh.f32 %v1091_v34 }
 0x2c6   : > { %v2313_v31 = vpop.eup %1659  ;;  %v1096_v33 = vpop.f32.mrf.mxu1  ;;  %1685 = vtanh.f32 %v980_v35  ;;  %v984_v5 = vadd.f32 %v983_v7, %v855_v23 }
 0x2c7   : > { %v2315_v50 = vpop.eup %1661  ;;  %v985_v12 = vpop.f32.mrf.mxu0  ;;  %1687 = vtanh.f32 %v1093_v42  ;;  %v1097_v15 = vadd.f32 %v1096_v33, %v855_v23  ;;  %v1185_v42 = vmul.f32 %v2313_v31, %v2319_v63 }
 0x2c8   : > { %v2317_v13 = vpop.eup %1663  ;;  %v1098_v32 = vpop.f32.mrf.mxu1  ;;  %v986_v61 = vadd.f32 %v985_v12, %v855_v23  ;;  %1689 = vtanh.f32 %v984_v5 }
 0x2c9   : > { %v1666_v18 = vpop.eup %1665  ;;  %v1099_v22 = vadd.f32 %v1098_v32, %v855_v23  ;;  %1691 = vtanh.f32 %v1097_v15  ;;  %v989_v16 = vpop.f32.mrf.mxu0  ;;  %v1184_v15 = vmul.f32 %v2315_v50, %v2319_v63 }
 0x2ca   : > { %v1668_v24 = vpop.eup %1667  ;;  %1693 = vtanh.f32 %v986_v61  ;;  %v1102_v62 = vpop.f32.mrf.mxu1  ;;  %v990_v21 = vadd.f32 %v989_v16, %v859_v56  ;;  %v1187_v8 = vmul.f32 %v1666_v18, %v1157_v36 }
 0x2cb   : > { %v1670_v25 = vpop.eup %1669  ;;  %1695 = vtanh.f32 %v1099_v22  ;;  %v991_v26 = vpop.f32.mrf.mxu0  ;;  %v1103_v27 = vadd.f32 %v1102_v62, %v859_v56  ;;  %v1189_v43 = vmul.f32 %v1668_v24, %v1157_v36 }
 0x2cc   : > { %v1672_v28 = vpop.eup %1671  ;;  %v1104_v38 = vpop.f32.mrf.mxu1  ;;  %v992_v41 = vadd.f32 %v991_v26, %v859_v56  ;;  %1697 = vtanh.f32 %v990_v21  ;;  %v1188_v14 = vmul.f32 %v1670_v25, %v1157_v36 }
 0x2cd   : > { %v1674_v39 = vpop.eup %1673  ;;  %v1105_v45 = vadd.f32 %v1104_v38, %v859_v56  ;;  %1699 = vtanh.f32 %v1103_v27  ;;  %v995_v49 = vpop.f32.mrf.mxu0  ;;  %v1190_v56 = vmul.f32 %v1672_v28, %v1157_v36  ;;  %v1241_v16 = vadd.f32 %v1189_v43, %v1185_v42 }
 0x2ce   : > { %v1676_v46 = vpop.eup %1675  ;;  %1701 = vtanh.f32 %v992_v41  ;;  %v996_v48 = vadd.f32 %v995_v49, %v863_v30  ;;  %v1108_v51 = vpop.f32.mrf.mxu1  ;;  %v1191_v35 = vmul.f32 %v1674_v39, %v1161_v2  ;;  %v1228_v31 = vadd.f32 %v1188_v14, %v1184_v15 }
 0x2cf   : > { %v1678_v54 = vpop.eup %1677  ;;  %1703 = vtanh.f32 %v1105_v45  ;;  %v1109_v9 = vadd.f32 %v1108_v51, %v863_v30  ;;  %v997_v10 = vpop.f32.mrf.mxu0  ;;  %v1193_v33 = vmul.f32 %v1676_v46, %v1161_v2 }
 0x2d0   : > { %v1680_v37 = vpop.eup %1679  ;;  %1705 = vtanh.f32 %v996_v48  ;;  %v998_v11 = vadd.f32 %v997_v10, %v863_v30  ;;  %v1110_v6 = vpop.f32.mrf.mxu1  ;;  %v1192_v61 = vmul.f32 %v1678_v54, %v1161_v2 }
 0x2d1   : > { %v1682_v44 = vpop.eup %1681  ;;  %1707 = vtanh.f32 %v1109_v9  ;;  %v1111_v1 = vadd.f32 %v1110_v6, %v863_v30  ;;  %v1001_v59 = vpop.f32.mrf.mxu0  ;;  %v1183_v30 = vmul.f32 %v2311_v52, %v2319_v63  ;;  %v1186_v52 = vmul.f32 %v2317_v13, %v2319_v63 }
 0x2d2   : > { %v1684_v4 = vpop.eup %1683  ;;  %1709 = vtanh.f32 %v998_v11  ;;  %v1002_v23 = vadd.f32 %v1001_v59, %v867_v29  ;;  %v1114_v3 = vpop.f32.mrf.mxu1  ;;  %v1195_v18 = vmul.f32 %v1682_v44, %v1165_v57  ;;  %v1194_v24 = vmul.f32 %v1680_v37, %v1161_v2 }
 0x2d3   : > { %v1686_v40 = vpop.eup %1685  ;;  %1711 = vtanh.f32 %v1111_v1  ;;  %v1115_v58 = vadd.f32 %v1114_v3, %v867_v29  ;;  %v1003_v0 = vpop.f32.mrf.mxu0  ;;  %v1215_v32 = vadd.f32 %v1187_v8, %v1183_v30  ;;  %v1197_v62 = vmul.f32 %v1684_v4, %v1165_v57 }
 0x2d4   : > { %v1688_v53 = vpop.eup %1687  ;;  %1713 = vtanh.f32 %v1002_v23  ;;  %v1004_v19 = vadd.f32 %v1003_v0, %v867_v29  ;;  %v1116_v55 = vpop.f32.mrf.mxu1  ;;  %v1196_v26 = vmul.f32 %v1686_v40, %v1165_v57  ;;  %v1254_v28 = vadd.f32 %v1190_v56, %v1186_v52 }
 0x2d5   : > { %v1690_v47 = vpop.eup %1689  ;;  %1715 = vtanh.f32 %v1115_v58  ;;  %v1117_v60 = vadd.f32 %v1116_v55, %v867_v29  ;;  %v1169_v5 = vpop.permute.xlu0 %1168  ;;  %v1216_v25 = vadd.f32 %v1215_v32, %v1191_v35  ;;  %v1242_v38 = vadd.f32 %v1241_v16, %v1193_v33 }
 0x2d6   : > { %v1692_v34 = vpop.eup %1691  ;;  %1717 = vtanh.f32 %v1004_v19  ;;  %v1199_v27 = vmul.f32 %v1690_v47, %v1169_v5  ;;  %v1198_v41 = vmul.f32 %v1688_v53, %v1165_v57  ;;  %v1173_v39 = vpop.permute.xlu1 %1172  ;;  %v1229_v49 = vadd.f32 %v1228_v31, %v1192_v61 }
 0x2d7   : > { %v1694_v7 = vpop.eup %1693  ;;  %1719 = vtanh.f32 %v1117_v60  ;;  %v1201_v50 = vmul.f32 %v1692_v34, %v1169_v5  ;;  %v1217_v46 = vadd.f32 %v1216_v25, %v1195_v18  ;;  %v1255_v63 = vadd.f32 %v1254_v28, %v1194_v24 }
 0x2d8   : > { %v1696_v12 = vpop.eup %1695  ;;  %v1200_v48 = vmul.f32 %v1694_v7, %v1169_v5  ;;  %v1243_v54 = vadd.f32 %v1242_v38, %v1197_v62  ;;  %v1230_v11 = vadd.f32 %v1229_v49, %v1196_v26  ;;  %v1824_v28 = vmov 1966171168  }
 0x2d9   : > { %v1698_v22 = vpop.eup %1697  ;;  %v1202_v9 = vmul.f32 %v1696_v12, %v1169_v5  ;;  %v1177_v2 = vpop.permute.xlu0 %1176  ;;  %v1218_v6 = vadd.f32 %v1217_v46, %v1199_v27  ;;  %v1256_v36 = vadd.f32 %v1255_v63, %v1198_v41  ;;  %v1283_v38 = vunpack.c.l.s4 %v1824_v28 }
 0x2da   : > { %v1700_v21 = vpop.eup %1699  ;;  %v1203_v51 = vmul.f32 %v1698_v22, %v1173_v39  ;;  %v1244_v4 = vadd.f32 %v1243_v54, %v1201_v50  ;;  %v1231_v58 = vadd.f32 %v1230_v11, %v1200_v48  ;;  %v1181_v60 = vpop.permute.xlu1 %1180 }
 0x2db   : > { %v1702_v29 = vpop.eup %1701  ;;  %v1205_v10 = vmul.f32 %v1700_v21, %v1173_v39  ;;  %v1257_v55 = vadd.f32 %v1256_v36, %v1202_v9 }
 0x2dc   : > { %v1704_v45 = vpop.eup %1703  ;;  %v1204_v44 = vmul.f32 %v1702_v29, %v1173_v39  ;;  %v1219_v0 = vadd.f32 %v1218_v6, %v1203_v51 }
 0x2dd   : > { %v1706_v13 = vpop.eup %1705  ;;  %v1206_v23 = vmul.f32 %v1704_v45, %v1173_v39  ;;  %v1245_v8 = vadd.f32 %v1244_v4, %v1205_v10  ;;  %v1270_v9 = vpop.permute.xlu0 %1269 }
 0x2de   : > { %v1708_v37 = vpop.eup %1707  ;;  %v1207_v1 = vmul.f32 %v1706_v13, %v1177_v2  ;;  %v1232_v57 = vadd.f32 %v1231_v58, %v1204_v44  ;;  %v1284_v13 = vunpack.c.0.s8 %v1283_v38 }
 0x2df   : > { %v1710_v59 = vpop.eup %1709  ;;  %v1209_v3 = vmul.f32 %v1708_v37, %v1177_v2  ;;  %v1258_v35 = vadd.f32 %v1257_v55, %v1206_v23 }
 0x2e0   : > { %v1712_v40 = vpop.eup %1711  ;;  %v1208_v53 = vmul.f32 %v1710_v59, %v1177_v2  ;;  %v1220_v30 = vadd.f32 %v1219_v0, %v1207_v1  ;;  %v1287_v6 = vsub.s32 %v1284_v13, %v1992_v20 }
 0x2e1   : > { %v1714_v19 = vpop.eup %1713  ;;  %v1210_v47 = vmul.f32 %v1712_v40, %v1177_v2  ;;  %v1246_v42 = vadd.f32 %v1245_v8, %v1209_v3 }
 0x2e2   : > { %v1716_v43 = vpop.eup %1715  ;;  %v1211_v34 = vmul.f32 %v1714_v19, %v1181_v60  ;;  %v1233_v12 = vadd.f32 %v1232_v57, %v1208_v53 }
 0x2e3   : > { %v1718_v14 = vpop.eup %1717  ;;  %v1213_v7 = vmul.f32 %v1716_v43, %v1181_v60  ;;  %v1259_v61 = vadd.f32 %v1258_v35, %v1210_v47 }
 0x2e4   : > { %v1720_v56 = vpop.eup %1719  ;;  %v1212_v33 = vmul.f32 %v1718_v14, %v1181_v60  ;;  %v1221_v5 = vadd.f32 %v1220_v30, %v1211_v34 }
 0x2e5   : > { %v1214_v15 = vmul.f32 %v1720_v56, %v1181_v60  ;;  %v1247_v32 = vadd.f32 %v1246_v42, %v1213_v7 }
 0x2e6   : > { %v1222_v18 = vrot.slane %v1221_v5, 4  ;;  %v1234_v22 = vadd.f32 %v1233_v12, %v1212_v33 }
 0x2e7   : > { %v1248_v52 = vrot.slane %v1247_v32, 4  ;;  %v1260_v16 = vadd.f32 %v1259_v61, %v1214_v15 }
 0x2e8   : > { %v1223_v24 = vadd.f32 %v1222_v18, %v1221_v5  ;;  %v1235_v62 = vrot.slane %v1234_v22, 4 }
 0x2e9   : > { %v1249_v21 = vadd.f32 %v1248_v52, %v1247_v32  ;;  %v1261_v31 = vrot.slane %v1260_v16, 4 }
 0x2ea   : > { %v1236_v25 = vadd.f32 %v1235_v62, %v1234_v22  ;;  %v1224_v26 = vrot.slane %v1223_v24, 2 }
 0x2eb   : > { %v1262_v27 = vadd.f32 %v1261_v31, %v1260_v16  ;;  %v1250_v29 = vrot.slane %v1249_v21, 2 }
 0x2ec   : > { %v1225_v41 = vadd.f32 %v1224_v26, %v1223_v24  ;;  %v1237_v50 = vrot.slane %v1236_v25, 2 }
 0x2ed   : > { %v1251_v39 = vadd.f32 %v1250_v29, %v1249_v21  ;;  %v1263_v45 = vrot.slane %v1262_v27, 2 }
 0x2ee   : > { %v1226_v49 = vrot.slane %v1225_v41, 1  ;;  %v1238_v46 = vadd.f32 %v1237_v50, %v1236_v25 }
 0x2ef   : > { %v1252_v48 = vrot.slane %v1251_v39, 1  ;;  %v1264_v51 = vadd.f32 %v1263_v45, %v1262_v27 }
 0x2f0   : > { %v1227_v63 = vadd.f32 %v1226_v49, %v1225_v41  ;;  %v1239_v54 = vrot.slane %v1238_v46, 1 }
 0x2f1   : > { %v1253_v10 = vadd.f32 %v1252_v48, %v1251_v39  ;;  %v1265_v2 = vrot.slane %v1264_v51, 1 }
 0x2f2   : > { %v1240_v37 = vadd.f32 %v1239_v54, %v1238_v46  ;;  %v1272_v44 = vadd.f32 %v1270_v9, %v1227_v63 }
 0x2f3   : > { %v1266_v11 = vadd.f32 %v1265_v2, %v1264_v51  ;;  %v1274_v59 = vadd.f32 %v1270_v9, %v1253_v10 }
 0x2f4   : > { %v1273_v1 = vadd.f32 %v1270_v9, %v1240_v37 }
 0x2f5   : > { %v1275_v36 = vadd.f32 %v1270_v9, %v1266_v11 }
 0x2f6   : > { %v1280_v4 = vcombine.low %v1272_v44, %v1273_v1 }
 0x2f7   : > { %v1281_v23 = vcombine.low %v1274_v59, %v1275_v36 }
 0x2f8   : > { %v1288_v3 = vrot.slane %v1280_v4, %v1287_v6 }
 0x2f9   : > { %v1295_v40 = vrot.slane %v1281_v23, %v1287_v6 }
 0x2fb   : > { %v1296_v58 = vcombine.low %v1288_v3, %v1295_v40 }
 0x2fd   : > { %v1303_v0 = vrot.slane %v1296_v58, %v1287_v6 }
 0x2ff   : > { %1309 = vst.msk [vmem:[%s179_s19] sm:$0xf] %vm1307_vm1, %v1303_v0 }
 0x300   : > { %1760 = shalt.err (!%p1757_p0)
}
 0x301   : > { %s1761_s4 = scalar_lea.hbm %s1323_s26, 64  ;;  %s1765_s7 = scalar_lea.hbm %s2368_s3, 128 }
 0x302   : > { %p1762_p1 = scmp.ne.s32.totalorder %s1323_s26, %s1761_s4  ;;  %p1766_p4 = scmp.lt.s32.totalorder %s1323_s26, %s2368_s3 }
 0x303   : > { %p1767_p7 = scmp.lt.s32.totalorder %s1765_s7, %s1761_s4 }
 0x304   : > { %p1763_p2 = pnand %p1762_p1, %p1884_p5 }
 0x305   : > { %p1768_p6 = por %p1767_p7, %p1766_p4 }
 0x306   : > { %p1764_p3 = pneg %p1763_p2 }
 0x308   : > { %p1769_p8 = pnand %p1768_p6, %p1764_p3 }
 0x30a   : > { %1772 = shalt.err (!%p1769_p8)
}
 0x30b   : > { %1448 = dma.vmem_to_hbm [thread:$0]  (%p1884_p5), %s1326_s20, 64, %s1323_s26, %s1311_s27  }
 0x30c PF: > { %p1460_p9 = scmp.ge.s32.totalorder %s1811_s15, 2  ;;  %s1337_s10 = sand.u32 1, %s1799_s12  }
 0x30d   : > { %p2372_p10 = scmp.ne.s32.totalorder %s2370_s23, 0  ;;  %s1338_s11 = scalar_lea.sflag [#allocation4], %s1337_s10 }
 0x30f   : > { %p1455_p11 = pnand %p1460_p9, %p2372_p10 }
 0x311   : > { %p1456_p12 = pneg %p1455_p11 }
 0x313   : > { %1794 = dma.done.wait (%p1456_p12), %s1338_s11, 64  }
 0x314   : > { %1796 = vsyncadd (%p1456_p12), %s1338_s11, 4294967232  ;;  %p14_p13 = scmp.ge.s32.totalorder %s1871_s18, 4   ;;  %s2373_s12 = smov %s1803_s13 }
 0x315   : > { %s2374_s13 = smov %s1807_s14  ;;  %s2375_s14 = smov %s1882_s21 }
 0x316   : > { %s2376_s15 = smov %s1871_s18  ;;  %16 = sbr.rel (!%p14_p13) target bundleno = 4 (0x4), region = 74 }
 0x31b   :  { %1343 = vsyncpa [#allocation3], 1 }
 0x31c   :  { %1345 = vsyncpa [#allocation3 + $0x1], 1 }
 0x31d   :  { %1346 = vsyncpa [#allocation4], 1 }
 0x31e   :  { %1348 = vsyncpa [#allocation4 + $0x1], 1 }

</bundles_post_ra>
